<compile_context>
chip_gen: v6e
topology: v6e:2x2x1
jax: 0.10.0
libtpu: 0.0.40
codegen_flags: <defaults>
</compile_context>

<pallas_src>
import jax
import jax.numpy as jnp
from jax.experimental import pallas as pl
from jax.experimental.pallas import tpu as pltpu

K_IN = 784
H1 = 128
H2 = 64
H2_PAD = 128       # 64 padded up to 128 lanes
C_PAD = 128        # 10 padded up to 128 (lane-dense output)
NUM_CLASSES = 10


def mlp_kernel(x_ref, w1_ref, b1_ref, w2_ref, b2_ref, w3_ref, b3_ref, o_ref):
    # f32 -> bf16 cast inside the kernel (hidden under the input DMA).
    x = x_ref[...].astype(jnp.bfloat16)
    # fc1 + ReLU  (bf16 operands on the MXU, f32 accumulate / elementwise)
    h1 = jnp.dot(x, w1_ref[...], preferred_element_type=jnp.float32)
    h1 = jnp.maximum(h1 + b1_ref[...], 0.0)
    # fc2 + ReLU
    h2 = jnp.dot(h1.astype(jnp.bfloat16), w2_ref[...],
                 preferred_element_type=jnp.float32)
    h2 = jnp.maximum(h2 + b2_ref[...], 0.0)
    # fc3 + softmax over the feature axis (padded classes carry bias -1e30 ->
    # their exp underflows to exactly 0 and does not perturb the denominator).
    logits = jnp.dot(h2.astype(jnp.bfloat16), w3_ref[...],
                     preferred_element_type=jnp.float32)
    logits = logits + b3_ref[...]
    m = jnp.max(logits, axis=-1, keepdims=True)
    e = jnp.exp(logits - m)
    denom = jnp.sum(e, axis=-1, keepdims=True)
    # approx=False keeps row sums exact to ~1e-6; flip to approx=True for the
    # free EUP vrcp slot if ~1e-4 relative error on the denominator is OK.
    o_ref[...] = (e * pl.reciprocal(denom, approx=False)).astype(o_ref.dtype)


def _device_config():
    """Pick (batch tile, vmem limit) from the local TPU generation."""
    try:
        kind = jax.devices()[0].device_kind.lower()
    except Exception:  # pragma: no cover - CPU interpret fallback
        kind = ""
    if ("v5" in kind) or ("v6" in kind):
        # 128 MiB physical VMEM: bigger tiles push DMA toward the HBM roofline.
        return 4096, 96 * 1024 * 1024
    # v7x (and unknown): 64 MiB VMEM per TC -> keep scoped VMEM under ~48 MiB.
    return 2048, 48 * 1024 * 1024


def mlp_forward(x, params, *, tb=None, vmem_limit_bytes=None):
    """x: (B, 784) float32.  params: packed bf16 weights / f32 biases."""
    w1, b1, w2, b2, w3, b3 = params
    B, k_in = x.shape
    assert k_in == K_IN

    tb_default, vmem_default = _device_config()
    tb = tb_default if tb is None else tb
    vmem_limit_bytes = vmem_default if vmem_limit_bytes is None else vmem_limit_bytes

    # Pad the batch to a multiple of 16 (bf16 sublane packing for the
    # intermediates) and of the batch tile, so no grid block overhangs.
    b_pad = max(16, ((B + 15) // 16) * 16)
    tb = min(tb, b_pad)
    b_pad = ((b_pad + tb - 1) // tb) * tb
    xp = x if b_pad == B else jnp.pad(x, ((0, b_pad - B), (0, 0)))

    grid = (b_pad // tb,)

    resident = lambda i: (0, 0)  # weights/biases fetched once, VMEM-resident
    grid_spec = pltpu.PrefetchScalarGridSpec(
        num_scalar_prefetch=0,
        grid=grid,
        in_specs=[
            # (tb, 784): last dim equals the full array dim, so the (8,128)
            # divisibility rule is satisfied; Mosaic lane-pads in VMEM for free.
            pl.BlockSpec((tb, K_IN), lambda i: (i, 0)),    # x tile, pipelined
            pl.BlockSpec((K_IN, H1), resident),            # w1
            pl.BlockSpec((1, H1), resident),               # b1
            pl.BlockSpec((H1, H2_PAD), resident),          # w2
            pl.BlockSpec((1, H2_PAD), resident),           # b2
            pl.BlockSpec((H2_PAD, C_PAD), resident),       # w3
            pl.BlockSpec((1, C_PAD), resident),            # b3
        ],
        out_specs=pl.BlockSpec((tb, C_PAD), lambda i: (i, 0)),
    )

    flops = 2 * b_pad * (K_IN * H1 + H1 * H2_PAD + H2_PAD * C_PAD)
    bytes_accessed = (
        b_pad * K_IN * 4                              # f32 activations in
        + (w1.size + w2.size + w3.size) * 2           # bf16 weights
        + (b1.size + b2.size + b3.size) * 4           # f32 biases
        + b_pad * C_PAD * 4                           # f32 output
    )

    out = pl.pallas_call(
        mlp_kernel,
        out_shape=jax.ShapeDtypeStruct((b_pad, C_PAD), jnp.float32),
        grid_spec=grid_spec,
        compiler_params=pltpu.CompilerParams(
            dimension_semantics=("parallel",),       # megacore-shard the batch
            vmem_limit_bytes=vmem_limit_bytes,
        ),
        cost_estimate=pl.CostEstimate(
            flops=flops,
            transcendentals=b_pad * C_PAD,
            bytes_accessed=bytes_accessed,
        ),
    )(xp, w1, b1, w2, b2, w3, b3)
    return out[:B, :NUM_CLASSES]


def init_params(key):
    # Deterministic init mimicking nn.Linear's uniform(-1/sqrt(fan_in), +1/sqrt(fan_in)).
    def linear(k, fan_in, fan_out):
        kw, kb = jax.random.split(k)
        bound = 1.0 / jnp.sqrt(fan_in)
        w = jax.random.uniform(kw, (fan_in, fan_out), jnp.float32, -bound, bound)
        b = jax.random.uniform(kb, (1, fan_out), jnp.float32, -bound, bound)
        return w, b

    k1, k2, k3 = jax.random.split(key, 3)
    w1, b1 = linear(k1, 784, 128)
    w2, b2 = linear(k2, 128, 64)
    w3, b3 = linear(k3, 64, 10)
    return w1, b1, w2, b2, w3, b3


def pack_params(w1, b1, w2, b2, w3, b3):
    """One-time dtype packing / lane padding of the weights for the kernel."""
    w1p = w1.astype(jnp.bfloat16)                                  # (784, 128)
    b1p = b1.astype(jnp.float32)
    w2p = jnp.pad(w2, ((0, 0), (0, H2_PAD - H2))).astype(jnp.bfloat16)
    b2p = jnp.pad(b2, ((0, 0), (0, H2_PAD - H2))).astype(jnp.float32)
    w3p = jnp.pad(w3, ((0, H2_PAD - H2), (0, C_PAD - NUM_CLASSES))).astype(jnp.bfloat16)
    # Padded class logits get a huge negative bias -> softmax drives them to 0.
    b3p = jnp.pad(b3, ((0, 0), (0, C_PAD - NUM_CLASSES)),
                  constant_values=-1e30).astype(jnp.float32)
    return w1p, b1p, w2p, b2p, w3p, b3p


if __name__ == "__main__":
    key = jax.random.PRNGKey(0)
    kx, kp = jax.random.split(key)

    batch = 8
    x = jax.random.normal(kx, (batch, 784), jnp.float32)
    w1, b1, w2, b2, w3, b3 = init_params(kp)
    params = pack_params(w1, b1, w2, b2, w3, b3)

    out = mlp_forward(x, params)
    out = jax.block_until_ready(out)
    assert out.shape == (batch, NUM_CLASSES)

    # Reference 1: mirror the kernel's bf16-matmul / f32-accumulate arithmetic.
    def bf16_dot(a, b):
        return jnp.dot(a.astype(jnp.bfloat16), b.astype(jnp.bfloat16),
                       preferred_element_type=jnp.float32)

    h1 = jnp.maximum(bf16_dot(x, w1) + b1, 0.0)
    h2 = jnp.maximum(bf16_dot(h1, w2) + b2, 0.0)
    ref_bf16 = jax.nn.softmax(bf16_dot(h2, w3) + b3, axis=1)
    assert jnp.allclose(out, ref_bf16, atol=2e-3, rtol=0.0), \
        float(jnp.max(jnp.abs(out - ref_bf16)))

    # Reference 2: full-f32 PyTorch semantics (looser tol due to bf16 weights).
    h1f = jnp.maximum(x @ w1 + b1, 0.0)
    h2f = jnp.maximum(h1f @ w2 + b2, 0.0)
    ref_f32 = jax.nn.softmax(h2f @ w3 + b3, axis=1)
    assert jnp.allclose(out, ref_f32, atol=5e-2), \
        float(jnp.max(jnp.abs(out - ref_f32)))

    # Softmax rows must sum to 1.
    assert jnp.allclose(jnp.sum(out, axis=1), 1.0, atol=1e-5)

    print("KERNEL_OK")
</pallas_src>

<mosaic_0001>
module attributes {stable_mosaic.version = 11 : i64} {
  func.func @mlp_kernel(%arg0: i32, %arg1: memref<16x784xf32, #tpu.memory_space<vmem>>, %arg2: memref<784x128xbf16, #tpu.memory_space<vmem>>, %arg3: memref<1x128xf32, #tpu.memory_space<vmem>>, %arg4: memref<128x128xbf16, #tpu.memory_space<vmem>>, %arg5: memref<1x128xf32, #tpu.memory_space<vmem>>, %arg6: memref<128x128xbf16, #tpu.memory_space<vmem>>, %arg7: memref<1x128xf32, #tpu.memory_space<vmem>>, %arg8: memref<16x128xf32, #tpu.memory_space<vmem>>) attributes {dimension_semantics = [#tpu.dimension_semantics<parallel>], iteration_bounds = array<i64: 1>, scalar_prefetch = 0 : i64, scratch_operands = 0 : i64, tpu.core_type = #tpu.core_type<tc>, window_params = [{transform_indices = @transform_0, window_bounds = array<i64: 16, 784>}, {pipeline_mode = #tpu.pipeline_mode<synchronous>, transform_indices = @transform_1, window_bounds = array<i64: 784, 128>}, {pipeline_mode = #tpu.pipeline_mode<synchronous>, transform_indices = @transform_2, window_bounds = array<i64: 1, 128>}, {pipeline_mode = #tpu.pipeline_mode<synchronous>, transform_indices = @transform_3, window_bounds = array<i64: 128, 128>}, {pipeline_mode = #tpu.pipeline_mode<synchronous>, transform_indices = @transform_4, window_bounds = array<i64: 1, 128>}, {pipeline_mode = #tpu.pipeline_mode<synchronous>, transform_indices = @transform_5, window_bounds = array<i64: 128, 128>}, {pipeline_mode = #tpu.pipeline_mode<synchronous>, transform_indices = @transform_6, window_bounds = array<i64: 1, 128>}, {transform_indices = @transform_7, window_bounds = array<i64: 16, 128>}]} {
    %c0 = arith.constant 0 : index
    %c0_0 = arith.constant 0 : index
    %0 = vector.load %arg1[%c0, %c0_0] : memref<16x784xf32, #tpu.memory_space<vmem>>, vector<16x784xf32>
    %1 = arith.truncf %0 : vector<16x784xf32> to vector<16x784xbf16>
    %c0_1 = arith.constant 0 : index
    %c0_2 = arith.constant 0 : index
    %2 = vector.load %arg2[%c0_1, %c0_2] : memref<784x128xbf16, #tpu.memory_space<vmem>>, vector<784x128xbf16>
    %cst = arith.constant dense<0.000000e+00> : vector<16x128xf32>
    %3 = tpu.matmul %1, %2, %cst {dimension_numbers = #tpu.dot_dimension_numbers<[1], [0], [0], [1], [0, 0, 1, 1], [], []>} : vector<16x784xbf16>, vector<784x128xbf16>, vector<16x128xf32> -> vector<16x128xf32>
    %c0_3 = arith.constant 0 : index
    %c0_4 = arith.constant 0 : index
    %4 = vector.load %arg3[%c0_3, %c0_4] : memref<1x128xf32, #tpu.memory_space<vmem>>, vector<1x128xf32>
    %5 = vector.broadcast %4 : vector<1x128xf32> to vector<16x128xf32>
    %6 = arith.addf %3, %5 : vector<16x128xf32>
    %cst_5 = arith.constant 0.000000e+00 : f32
    %7 = vector.broadcast %cst_5 : f32 to vector<16x128xf32>
    %8 = arith.maximumf %6, %7 : vector<16x128xf32>
    %9 = arith.truncf %8 : vector<16x128xf32> to vector<16x128xbf16>
    %c0_6 = arith.constant 0 : index
    %c0_7 = arith.constant 0 : index
    %10 = vector.load %arg4[%c0_6, %c0_7] : memref<128x128xbf16, #tpu.memory_space<vmem>>, vector<128x128xbf16>
    %cst_8 = arith.constant dense<0.000000e+00> : vector<16x128xf32>
    %11 = tpu.matmul %9, %10, %cst_8 {dimension_numbers = #tpu.dot_dimension_numbers<[1], [0], [0], [1], [0, 0, 1, 1], [], []>} : vector<16x128xbf16>, vector<128x128xbf16>, vector<16x128xf32> -> vector<16x128xf32>
    %c0_9 = arith.constant 0 : index
    %c0_10 = arith.constant 0 : index
    %12 = vector.load %arg5[%c0_9, %c0_10] : memref<1x128xf32, #tpu.memory_space<vmem>>, vector<1x128xf32>
    %13 = vector.broadcast %12 : vector<1x128xf32> to vector<16x128xf32>
    %14 = arith.addf %11, %13 : vector<16x128xf32>
    %cst_11 = arith.constant 0.000000e+00 : f32
    %15 = vector.broadcast %cst_11 : f32 to vector<16x128xf32>
    %16 = arith.maximumf %14, %15 : vector<16x128xf32>
    %17 = arith.truncf %16 : vector<16x128xf32> to vector<16x128xbf16>
    %c0_12 = arith.constant 0 : index
    %c0_13 = arith.constant 0 : index
    %18 = vector.load %arg6[%c0_12, %c0_13] : memref<128x128xbf16, #tpu.memory_space<vmem>>, vector<128x128xbf16>
    %cst_14 = arith.constant dense<0.000000e+00> : vector<16x128xf32>
    %19 = tpu.matmul %17, %18, %cst_14 {dimension_numbers = #tpu.dot_dimension_numbers<[1], [0], [0], [1], [0, 0, 1, 1], [], []>} : vector<16x128xbf16>, vector<128x128xbf16>, vector<16x128xf32> -> vector<16x128xf32>
    %c0_15 = arith.constant 0 : index
    %c0_16 = arith.constant 0 : index
    %20 = vector.load %arg7[%c0_15, %c0_16] : memref<1x128xf32, #tpu.memory_space<vmem>>, vector<1x128xf32>
    %21 = vector.broadcast %20 : vector<1x128xf32> to vector<16x128xf32>
    %22 = arith.addf %19, %21 : vector<16x128xf32>
    %cst_17 = arith.constant dense<0xFF800000> : vector<16xf32>
    %23 = vector.multi_reduction <maximumf>, %22, %cst_17 [1] : vector<16x128xf32> to vector<16xf32>
    %24 = vector.shape_cast %23 : vector<16xf32> to vector<16x1xf32>
    %25 = vector.broadcast %24 : vector<16x1xf32> to vector<16x128xf32>
    %26 = arith.subf %22, %25 : vector<16x128xf32>
    %27 = math.exp %26 : vector<16x128xf32>
    %cst_18 = arith.constant dense<0.000000e+00> : vector<16xf32>
    %28 = vector.multi_reduction <add>, %27, %cst_18 [1] : vector<16x128xf32> to vector<16xf32>
    %29 = vector.shape_cast %28 : vector<16xf32> to vector<16x1xf32>
    %30 = tpu.reciprocal %29 : vector<16x1xf32> -> vector<16x1xf32>
    %31 = vector.broadcast %30 : vector<16x1xf32> to vector<16x128xf32>
    %32 = arith.mulf %27, %31 : vector<16x128xf32>
    %c0_19 = arith.constant 0 : index
    %c0_20 = arith.constant 0 : index
    %33 = vector.load %arg8[%c0_19, %c0_20] : memref<16x128xf32, #tpu.memory_space<vmem>>, vector<16x128xf32>
    tpu.vector_store %arg8[%c0_19, %c0_20], %32 {strides = array<i32>} : memref<16x128xf32, #tpu.memory_space<vmem>>, vector<16x128xf32>,
    return
  }
  func.func @transform_0(%arg0: i32) -> (i32, i32) {
    %c0_i32 = arith.constant 0 : i32
    %c0_i32_0 = arith.constant 0 : i32
    return %arg0, %c0_i32 : i32, i32
  }
  func.func @transform_1(%arg0: i32) -> (i32, i32) {
    %c0_i32 = arith.constant 0 : i32
    %c0_i32_0 = arith.constant 0 : i32
    %c0_i32_1 = arith.constant 0 : i32
    return %c0_i32, %c0_i32_0 : i32, i32
  }
  func.func @transform_2(%arg0: i32) -> (i32, i32) {
    %c0_i32 = arith.constant 0 : i32
    %c0_i32_0 = arith.constant 0 : i32
    %c0_i32_1 = arith.constant 0 : i32
    return %c0_i32, %c0_i32_0 : i32, i32
  }
  func.func @transform_3(%arg0: i32) -> (i32, i32) {
    %c0_i32 = arith.constant 0 : i32
    %c0_i32_0 = arith.constant 0 : i32
    %c0_i32_1 = arith.constant 0 : i32
    return %c0_i32, %c0_i32_0 : i32, i32
  }
  func.func @transform_4(%arg0: i32) -> (i32, i32) {
    %c0_i32 = arith.constant 0 : i32
    %c0_i32_0 = arith.constant 0 : i32
    %c0_i32_1 = arith.constant 0 : i32
    return %c0_i32, %c0_i32_0 : i32, i32
  }
  func.func @transform_5(%arg0: i32) -> (i32, i32) {
    %c0_i32 = arith.constant 0 : i32
    %c0_i32_0 = arith.constant 0 : i32
    %c0_i32_1 = arith.constant 0 : i32
    return %c0_i32, %c0_i32_0 : i32, i32
  }
  func.func @transform_6(%arg0: i32) -> (i32, i32) {
    %c0_i32 = arith.constant 0 : i32
    %c0_i32_0 = arith.constant 0 : i32
    %c0_i32_1 = arith.constant 0 : i32
    return %c0_i32, %c0_i32_0 : i32, i32
  }
  func.func @transform_7(%arg0: i32) -> (i32, i32) {
    %c0_i32 = arith.constant 0 : i32
    %c0_i32_0 = arith.constant 0 : i32
    return %arg0, %c0_i32 : i32, i32
  }
}

</mosaic_0001>

<bundles_post_ra>
// kernel: tpu_custom_call.1
= control target key start
LH: loop header
LB: loop body
LE: loop exit
PB: predicated region body
PF: predicated region fallthrough
CT: control target
= control target key end

     0   :  { %12 = vsyncpa [#allocation3], 0  ;;  %s1444_s0 = inlined_call_operand.hbm [shape: f32[16,784], index: 0, kind: input, shape index: {}]   ;;  %s1445_s1 = inlined_call_operand.hbm [shape: bf16[784,128], index: 1, kind: input, shape index: {}]   ;;  %s1446_s2 = inlined_call_operand.vmem [shape: f32[1,128], index: 2, kind: input, shape index: {}]   ;;  %s1447_s3 = inlined_call_operand.hbm [shape: bf16[128,128], index: 3, kind: input, shape index: {}]   ;;  %s1448_s4 = inlined_call_operand.vmem [shape: f32[1,128], index: 4, kind: input, shape index: {}]   ;;  %s1449_s5 = inlined_call_operand.hbm [shape: bf16[128,128], index: 5, kind: input, shape index: {}]   ;;  %s1450_s6 = inlined_call_operand.vmem [shape: f32[1,128], index: 6, kind: input, shape index: {}]   ;;  %s1451_s7 = inlined_call_operand.hbm [shape: f32[16,128], index: 7, kind: output, shape index: {}]  }
   0x1   :  { %13 = vsyncpa [#allocation6], 0 }
   0x2   :  { %14 = vsyncpa [#allocation9], 0 }
   0x3   :  { %15 = vsyncpa [#allocation4], 0  ;;  %s1335_s24 = smov [#allocation5]  }
   0x4   :  { %s33_s25 = sshll.u32 %s1335_s24, 4  ;;  %s34_s25 = int_to_ptr.vmem [resolvable:$true] %s33_s25 }
   0x5   :  { %s1235_s26 = scalar_lea.vmem %s34_s25, 6272  ;;  %p1240_p1 = scmp.lt.s32.totalorder %s34_s25, %s34_s25 }
   0x6   :  { %p1236_p0 = scmp.ne.s32.totalorder %s34_s25, %s1235_s26  ;;  %p1241_p2 = scmp.lt.s32.totalorder %s1235_s26, %s1235_s26 }
   0x8   :  { %p1242_p3 = por %p1241_p2, %p1240_p1 }
   0xa   :  { %p1243_p4 = pnand %p1242_p3, %p1236_p0 }
   0xc   :  { %1246 = shalt.err (!%p1243_p4)
}
   0xd   :  { %s1336_s27 = smov 64   ;;  %s1337_s28 = smov 4  }
   0xe   :  { %39 = dma.hbm_to_vmem [thread:$0]  %s1445_s1, 6272, %s34_s25, [#allocation6], %s1336_s27, %s1336_s27, %s1337_s28  }
   0xf   :  { %s1338_s8 = smov [#allocation2]  }
  0x10   :  { %s21_s9 = sshll.u32 %s1338_s8, 4  ;;  %s22_s9 = int_to_ptr.vmem [resolvable:$true] %s21_s9 }
  0x11   :  { %s1255_s10 = scalar_lea.vmem %s22_s9, 1792  ;;  %p1260_p6 = scmp.lt.s32.totalorder %s22_s9, %s22_s9 }
  0x12   :  { %p1256_p5 = scmp.ne.s32.totalorder %s22_s9, %s1255_s10  ;;  %p1261_p7 = scmp.lt.s32.totalorder %s1255_s10, %s1255_s10 }
  0x14   :  { %p1262_p8 = por %p1261_p7, %p1260_p6 }
  0x16   :  { %p1263_p9 = pnand %p1262_p8, %p1256_p5 }
  0x18   :  { %1266 = shalt.err (!%p1263_p9)
}
  0x19   :  { %s1339_s11 = smov 896   ;;  %s1340_s12 = smov 56  }
  0x1a   :  { %27 = dma.hbm_to_vmem [thread:$0]  %s1444_s0, 1792, %s22_s9, [#allocation3], %s1339_s11, %s1339_s11, %s1340_s12  }
  0x1b   :  { %s1341_s15 = smov [#allocation7]   ;;  %s1342_s17 = smov [#allocation8]  }
  0x1c   :  { %s47_s16 = sshll.u32 %s1341_s15, 4  ;;  %s61_s1 = sshll.u32 %s1342_s17, 4  ;;  %s48_s16 = int_to_ptr.vmem [resolvable:$true] %s47_s16  ;;  %s62_s1 = int_to_ptr.vmem [resolvable:$true] %s61_s1 }
  0x1d   :  { %s1275_s18 = scalar_lea.vmem %s48_s16, 1024  ;;  %p1280_p11 = scmp.lt.s32.totalorder %s48_s16, %s48_s16 }
  0x1e   :  { %p1276_p10 = scmp.ne.s32.totalorder %s48_s16, %s1275_s18  ;;  %p1281_p12 = scmp.lt.s32.totalorder %s1275_s18, %s1275_s18 }
  0x20   :  { %p1282_p13 = por %p1281_p12, %p1280_p11 }
  0x22   :  { %p1283_p0 = pnand %p1282_p13, %p1276_p10 }
  0x24   :  { %1286 = shalt.err (!%p1283_p0)
}
  0x25   :  { %53 = dma.hbm_to_vmem [thread:$0]  %s1447_s3, 1024, %s48_s16, [#allocation6], %s1336_s27, %s1336_s27, %s1337_s28  }
  0x26   :  { %s1295_s0 = scalar_lea.vmem %s62_s1, 1024  ;;  %p1300_p2 = scmp.lt.s32.totalorder %s62_s1, %s62_s1 }
  0x27   :  { %p1296_p1 = scmp.ne.s32.totalorder %s62_s1, %s1295_s0  ;;  %p1301_p3 = scmp.lt.s32.totalorder %s1295_s0, %s1295_s0 }
  0x29   :  { %p1302_p4 = por %p1301_p3, %p1300_p2 }
  0x2b   :  { %p1303_p5 = pnand %p1302_p4, %p1296_p1 }
  0x2d   :  { %1306 = shalt.err (!%p1303_p5)
}
  0x2e   :  { %67 = dma.hbm_to_vmem [thread:$0]  %s1449_s5, 1024, %s62_s1, [#allocation9], %s1336_s27, %s1336_s27, %s1337_s28  }
  0x2f   :  { %1327 = dma.done.wait [#allocation3], 1792  }
  0x30   :  { %1328 = vsyncadd [#allocation3], 4294965504 }
  0x31   :  { %1329 = dma.done.wait [#allocation6], 7296  }
  0x32   :  { %1330 = vsyncadd [#allocation6], 4294960000 }
  0x33   :  { %1331 = dma.done.wait [#allocation9], 1024  }
  0x34   :  { %1332 = vsyncadd [#allocation9], 4294966272  ;;  %v1154_v0 = vld [vmem:[#allocation5 + $0x78] sm:$0xff]   ;;  %v1158_v4 = vld [vmem:[#allocation5 + $0x70] sm:$0xff]   ;;  %v1343_v43 = vmov 0.0   ;;  %vm1344_vm0 = vmmov 0  }
  0x35   :  { %v1155_v1 = vld [vmem:[#allocation5 + $0x38] sm:$0xff]   ;;  %1009 = vmatprep.subr.bf16.mxu0 %v1154_v0  ;;  %v1159_v5 = vld [vmem:[#allocation5 + $0x30] sm:$0xff]   ;;  %v1162_v8 = vld [vmem:[#allocation5 + $0x68] sm:$0xff]   ;;  %vm503_vm1 = vcmask 130048  }
  0x36   :  { %v1156_v2 = vld [vmem:[#allocation5 + $0xf8] sm:$0xff]   ;;  %1010 = vmatpush3.bf16.msra.mxu0 %v1155_v1  ;;  %v1160_v6 = vld [vmem:[#allocation5 + $0xf0] sm:$0xff]   ;;  %v1163_v9 = vld [vmem:[#allocation5 + $0x28] sm:$0xff]  }
  0x37   :  { %v1157_v3 = vld [vmem:[#allocation5 + $0xb8] sm:$0xff]   ;;  %1031 = vmatprep.subr.bf16.mxu1 %v1156_v2  ;;  %1011 = vmatprep.subr.bf16.mxu0 %v1158_v4  ;;  %v1161_v7 = vld [vmem:[#allocation5 + $0xb0] sm:$0xff]   ;;  %v1164_v10 = vld [vmem:[#allocation5 + $0xe8] sm:$0xff]  }
  0x38   :  { %1032 = vmatpush3.bf16.msra.mxu1 %v1157_v3  ;;  %v1165_v11 = vld [vmem:[#allocation5 + $0xa8] sm:$0xff]   ;;  %v1166_v12 = vld [vmem:[#allocation5 + $0x60] sm:$0xff]   ;;  %v1170_v16 = vld [vmem:[#allocation5 + $0x58] sm:$0xff]  }
  0x39   :  { %1033 = vmatprep.subr.bf16.mxu1 %v1160_v6  ;;  %v1167_v13 = vld [vmem:[#allocation5 + $0x20] sm:$0xff]   ;;  %v1171_v17 = vld [vmem:[#allocation5 + $0x18] sm:$0xff]   ;;  %v1174_v20 = vld [vmem:[#allocation5 + $0x50] sm:$0xff]  }
  0x3a   :  { %1012 = vmatpush3.bf16.msra.mxu0 %v1159_v5  ;;  %v1168_v14 = vld [vmem:[#allocation5 + $0xe0] sm:$0xff]   ;;  %v1172_v18 = vld [vmem:[#allocation5 + $0xd8] sm:$0xff]   ;;  %v1175_v21 = vld [vmem:[#allocation5 + $0x10] sm:$0xff]  }
  0x3b   :  { %1013 = vmatprep.subr.bf16.mxu0 %v1162_v8  ;;  %v1169_v15 = vld [vmem:[#allocation5 + $0xa0] sm:$0xff]   ;;  %v1173_v19 = vld [vmem:[#allocation5 + $0x98] sm:$0xff]   ;;  %v1176_v22 = vld [vmem:[#allocation5 + $0xd0] sm:$0xff]  }
  0x3c   :  { %1034 = vmatpush3.bf16.msra.mxu1 %v1161_v7  ;;  %v1177_v23 = vld [vmem:[#allocation5 + $0x90] sm:$0xff]   ;;  %v1178_v24 = vld [vmem:[#allocation5 + $0x48] sm:$0xff]   ;;  %v1182_v28 = vld [vmem:[#allocation5 + $0x40] sm:$0xff]  }
  0x3d   :  { %1035 = vmatprep.subr.bf16.mxu1 %v1164_v10  ;;  %v1179_v25 = vld [vmem:[#allocation5 + $0x8] sm:$0xff]   ;;  %v1183_v29 = vld [vmem:[#allocation5] sm:$0xff]   ;;  %v84_v31 = vld [vmem:[#allocation2 + $0x8] sm:$0xff] }
  0x3e   :  { %1014 = vmatpush3.bf16.msra.mxu0 %v1163_v9  ;;  %v1180_v26 = vld [vmem:[#allocation5 + $0xc8] sm:$0xff]   ;;  %v1184_v30 = vld [vmem:[#allocation5 + $0xc0] sm:$0xff]   ;;  %v91_v32 = vld [vmem:[#allocation2 + $0x40] sm:$0xff] }
  0x3f   :  { %1015 = vmatprep.subr.bf16.mxu0 %v1166_v12  ;;  %v1181_v27 = vld [vmem:[#allocation5 + $0x88] sm:$0xff]   ;;  %v98_v33 = vpack.c.bf16 %v91_v32, %v84_v31  ;;  %v1185_v34 = vld [vmem:[#allocation5 + $0x80] sm:$0xff]   ;;  %v83_v35 = vld [vmem:[#allocation2] sm:$0xff] }
  0x40   :  { %1036 = vmatpush3.bf16.msra.mxu1 %v1165_v11  ;;  %v90_v36 = vld [vmem:[#allocation2 + $0x38] sm:$0xff]  ;;  %v1186_v38 = vld [vmem:[#allocation5 + $0x178] sm:$0xff]   ;;  %v93_v40 = vld [vmem:[#allocation2 + $0x50] sm:$0xff] }
  0x41   :  { %1037 = vmatprep.subr.bf16.mxu1 %v1168_v14  ;;  %539 = vmatprep.mubr.bf16.mxu0 %v98_v33  ;;  %v97_v37 = vpack.c.bf16 %v90_v36, %v83_v35  ;;  %v86_v39 = vld [vmem:[#allocation2 + $0x18] sm:$0xff]  ;;  %v1187_v42 = vld [vmem:[#allocation5 + $0x138] sm:$0xff]   ;;  %v85_v44 = vld [vmem:[#allocation2 + $0x10] sm:$0xff] }
  0x42   :  { %1016 = vmatpush3.bf16.msra.mxu0 %v1167_v13  ;;  %v100_v41 = vpack.c.bf16 %v93_v40, %v86_v39  ;;  %v92_v45 = vld [vmem:[#allocation2 + $0x48] sm:$0xff]  ;;  %v1188_v47 = vld [vmem:[#allocation5 + $0x170] sm:$0xff]   ;;  %v1190_v49 = vld [vmem:[#allocation5 + $0x168] sm:$0xff]  }
  0x43   :  { %1017 = vmatprep.subr.bf16.mxu0 %v1170_v16  ;;  %v99_v46 = vpack.c.bf16 %v92_v45, %v85_v44  ;;  %v1189_v48 = vld [vmem:[#allocation5 + $0x130] sm:$0xff]   ;;  %v1191_v50 = vld [vmem:[#allocation5 + $0x128] sm:$0xff]   ;;  %v1192_v51 = vld [vmem:[#allocation5 + $0x160] sm:$0xff]  }
  0x44   :  { %1038 = vmatpush3.bf16.msra.mxu1 %v1169_v15  ;;  %580 = vmatprep.mubr.bf16.mxu1 %v100_v41  ;;  %v1193_v52 = vld [vmem:[#allocation5 + $0x120] sm:$0xff]   ;;  %v1194_v53 = vld [vmem:[#allocation5 + $0x158] sm:$0xff]   ;;  %v1196_v55 = vld [vmem:[#allocation5 + $0x150] sm:$0xff]  }
  0x45   :  { %1039 = vmatprep.subr.bf16.mxu1 %v1172_v18  ;;  %v1195_v54 = vld [vmem:[#allocation5 + $0x118] sm:$0xff]   ;;  %v1202_v56 = vld [vmem:[#allocation5 + $0x180] sm:$0xff]   ;;  %v1197_v58 = vld [vmem:[#allocation5 + $0x110] sm:$0xff]  }
  0x46   :  { %1018 = vmatpush3.bf16.msra.mxu0 %v1171_v17  ;;  %v88_v57 = vld [vmem:[#allocation2 + $0x28] sm:$0xff]  ;;  %v1198_v59 = vld [vmem:[#allocation5 + $0x148] sm:$0xff]   ;;  %v95_v60 = vld [vmem:[#allocation2 + $0x60] sm:$0xff] }
  0x47   :  { %1019 = vmatprep.subr.bf16.mxu0 %v1174_v20  ;;  %v102_v61 = vpack.c.bf16 %v95_v60, %v88_v57  ;;  %v89_v62 = vld [vmem:[#allocation2 + $0x30] sm:$0xff]  ;;  %v96_v63 = vld [vmem:[#allocation2 + $0x68] sm:$0xff]  ;;  %v1199_v1 = vld [vmem:[#allocation5 + $0x108] sm:$0xff]  }
  0x48   :  { %1040 = vmatpush3.bf16.msra.mxu1 %v1173_v19  ;;  %v103_v0 = vpack.c.bf16 %v96_v63, %v89_v62  ;;  %v1200_v2 = vld [vmem:[#allocation5 + $0x140] sm:$0xff]   ;;  %v87_v4 = vld [vmem:[#allocation2 + $0x20] sm:$0xff]  ;;  %v94_v5 = vld [vmem:[#allocation2 + $0x58] sm:$0xff] }
  0x49   :  { %1041 = vmatprep.subr.bf16.mxu1 %v1176_v22  ;;  %v1201_v3 = vld [vmem:[#allocation5 + $0x100] sm:$0xff]   ;;  %v101_v6 = vpack.c.bf16 %v94_v5, %v87_v4  ;;  %v1204_v8 = vld [vmem:[#allocation7 + $0x30] sm:$0xff]   ;;  %v1205_v9 = vld [vmem:[#allocation7 + $0x28] sm:$0xff]  }
  0x4a   :  { %1020 = vmatpush3.bf16.msra.mxu0 %v1175_v21  ;;  %v1203_v7 = vld [vmem:[#allocation7 + $0x38] sm:$0xff]   ;;  %v1206_v10 = vld [vmem:[#allocation7 + $0x20] sm:$0xff]   ;;  %v1208_v12 = vld [vmem:[#allocation7 + $0x10] sm:$0xff]  }
  0x4b   :  { %1021 = vmatprep.subr.bf16.mxu0 %v1178_v24  ;;  %v1207_v11 = vld [vmem:[#allocation7 + $0x18] sm:$0xff]   ;;  %v1209_v13 = vld [vmem:[#allocation7 + $0x8] sm:$0xff]   ;;  %v1210_v14 = vld [vmem:[#allocation7] sm:$0xff]  }
  0x4c   :  { %1042 = vmatpush3.bf16.msra.mxu1 %v1177_v23  ;;  %v1211_v15 = vld [vmem:[#allocation8 + $0x38] sm:$0xff]   ;;  %v1212_v16 = vld [vmem:[#allocation8 + $0x30] sm:$0xff]   ;;  %v1213_v17 = vld [vmem:[#allocation8 + $0x28] sm:$0xff]  }
  0x4d   :  { %1043 = vmatprep.subr.bf16.mxu1 %v1180_v26  ;;  %v1214_v18 = vld [vmem:[#allocation8 + $0x20] sm:$0xff]   ;;  %v1215_v19 = vld [vmem:[#allocation8 + $0x18] sm:$0xff]   ;;  %v940_v32 = vld [vmem:[%s1446_s2] ss:$0 sm:$0xff] }
  0x4e   :  { %1022 = vmatpush3.bf16.msra.mxu0 %v1179_v25  ;;  %v1218_v57 = vld [vmem:[#allocation8] sm:$0xff]  }
  0x4f   :  { %1023 = vmatprep.subr.bf16.mxu0 %v1182_v28 }
  0x50   :  { %1044 = vmatpush3.bf16.msra.mxu1 %v1181_v27 }
  0x51   :  { %1045 = vmatprep.subr.bf16.mxu1 %v1184_v30 }
  0x52   :  { %1024 = vmatpush3.bf16.msra.mxu0 %v1183_v29 }
  0x53   :  { %1053 = vmatprep.subr.bf16.mxu0 %v1186_v38 }
  0x54   :  { %1046 = vmatpush3.bf16.msra.mxu1 %v1185_v34 }
  0x55   :  { %1095 = vmatprep.subr.bf16.mxu1 %v1343_v43  ;;  %540 = vmatmul.mubr.bf16.vlgmr.msra.gmra.mxu0 %v97_v37 }
  0x56   :  { %1054 = vmatpush3.bf16.msra.mxu0 %v1187_v42  ;;  %621 = vmatprep.mubr.bf16.mxu0 %v102_v61 }
  0x57   :  { %581 = vmatmul.mubr.bf16.vlgmr.msra.gmra.mxu1 %v99_v46  ;;  %1055 = vmatprep.subr.bf16.mxu0 %v1188_v47 }
  0x58   :  { %1097 = vmatprep.mubr.msk.bf16.mxu1 %vm1344_vm0, %v1343_v43  ;;  %1096 = vmatpush3.bf16.msra.mxu1 %v1202_v56  ;;  %v1217_v56 = vld [vmem:[#allocation8 + $0x8] sm:$0xff]  }
  0x59   :  { %1101 = vmatprep.subr.bf16.mxu1 %v1343_v43 }
  0x5a   :  { %1056 = vmatpush3.bf16.msra.mxu0 %v1189_v48 }
  0x5b   :  { %1057 = vmatprep.subr.bf16.mxu0 %v1190_v49 }
  0x5e   :  { %1058 = vmatpush3.bf16.msra.mxu0 %v1191_v50 }
  0x5f   :  { %1059 = vmatprep.subr.bf16.mxu0 %v1192_v51  ;;  %1098 = vmatmul.mubr.msk.bf16.vlgmr.msra.gmra.mxu1 %vm503_vm1, %v103_v0 }
  0x60   :  { %1117 = vmatprep.mubr.msk.bf16.mxu1 %vm1344_vm0, %v1343_v43  ;;  %1102 = vmatpush3.bf16.msra.mxu1 %v1203_v7 }
  0x61   :  { %1103 = vmatprep.subr.bf16.mxu1 %v1343_v43 }
  0x62   :  { %1060 = vmatpush3.bf16.msra.mxu0 %v1193_v52 }
  0x63   :  { %1061 = vmatprep.subr.bf16.mxu0 %v1194_v53 }
  0x64   :  { %1104 = vmatpush3.bf16.msra.mxu1 %v1204_v8 }
  0x65   :  { %1105 = vmatprep.subr.bf16.mxu1 %v1343_v43 }
  0x66   :  { %1062 = vmatpush3.bf16.msra.mxu0 %v1195_v54 }
  0x67   :  { %1063 = vmatprep.subr.bf16.mxu0 %v1196_v55  ;;  %v1216_v55 = vld [vmem:[#allocation8 + $0x10] sm:$0xff]  }
  0x68   :  { %1106 = vmatpush3.bf16.msra.mxu1 %v1205_v9 }
  0x69   :  { %1107 = vmatprep.subr.bf16.mxu1 %v1343_v43 }
  0x6a   :  { %1064 = vmatpush3.bf16.msra.mxu0 %v1197_v58  ;;  %v991_v58 = vld [vmem:[%s1448_s4] ss:$0 sm:$0xff]  ;;  %s1345_s4 = smov [#allocation10]  }
  0x6b   :  { %1065 = vmatprep.subr.bf16.mxu0 %v1198_v59 }
  0x6c   :  { %1108 = vmatpush3.bf16.msra.mxu1 %v1206_v10 }
  0x6d   :  { %1109 = vmatprep.subr.bf16.mxu1 %v1343_v43 }
  0x6e   :  { %1066 = vmatpush3.bf16.msra.mxu0 %v1199_v1 }
  0x6f   :  { %1067 = vmatprep.subr.bf16.mxu0 %v1200_v2 }
  0x70   :  { %1110 = vmatpush3.bf16.msra.mxu1 %v1207_v11 }
  0x71   :  { %1111 = vmatprep.subr.bf16.mxu1 %v1343_v43 }
  0x72   :  { %1068 = vmatpush3.bf16.msra.mxu0 %v1201_v3 }
  0x73   :  { %1121 = vmatprep.subr.bf16.mxu0 %v1343_v43 }
  0x74   :  { %1112 = vmatpush3.bf16.msra.mxu1 %v1208_v12 }
  0x75   :  { %622 = vmatmul.mubr.bf16.vlgmr.msra.gmra.mxu0 %v101_v6  ;;  %1113 = vmatprep.subr.bf16.mxu1 %v1343_v43 }
  0x76   :  { %1137 = vmatprep.mubr.msk.bf16.mxu0 %vm1344_vm0, %v1343_v43  ;;  %1122 = vmatpush3.bf16.msra.mxu0 %v1211_v15 }
  0x77   :  { %1123 = vmatprep.subr.bf16.mxu0 %v1343_v43 }
  0x78   :  { %1114 = vmatpush3.bf16.msra.mxu1 %v1209_v13 }
  0x79   :  { %1115 = vmatprep.subr.bf16.mxu1 %v1343_v43 }
  0x7a   :  { %1124 = vmatpush3.bf16.msra.mxu0 %v1212_v16 }
  0x7b   :  { %1125 = vmatprep.subr.bf16.mxu0 %v1343_v43 }
  0x7c   :  { %1116 = vmatpush3.bf16.msra.mxu1 %v1210_v14 }
  0x7e   :  { %1126 = vmatpush3.bf16.msra.mxu0 %v1213_v17 }
  0x7f   :  { %1127 = vmatprep.subr.bf16.mxu0 %v1343_v43 }
  0x82   :  { %1128 = vmatpush3.bf16.msra.mxu0 %v1214_v18 }
  0x83   :  { %1129 = vmatprep.subr.bf16.mxu0 %v1343_v43 }
  0x86   :  { %1130 = vmatpush3.bf16.msra.mxu0 %v1215_v19 }
  0x87   :  { %1131 = vmatprep.subr.bf16.mxu0 %v1343_v43 }
  0x8a   :  { %1132 = vmatpush3.bf16.msra.mxu0 %v1216_v55 }
  0x8b   :  { %1133 = vmatprep.subr.bf16.mxu0 %v1343_v43 }
  0x8e   :  { %1134 = vmatpush3.bf16.msra.mxu0 %v1217_v56 }
  0x8f   :  { %1135 = vmatprep.subr.bf16.mxu0 %v1343_v43  ;;  %v1000_v43 = vld [vmem:[%s1450_s6] ss:$0 sm:$0xff]  ;;  %s926_s6 = sshll.u32 %s1345_s4, 4  ;;  %s927_s6 = int_to_ptr.vmem [resolvable:$true] %s926_s6 }
  0x90   :  { %s1307_s26 = scalar_lea.vmem %s927_s6, 256  ;;  %p1312_p7 = scmp.lt.s32.totalorder %s927_s6, %s927_s6 }
  0x91   :  { %p1308_p6 = scmp.ne.s32.totalorder %s927_s6, %s1307_s26  ;;  %p1313_p8 = scmp.lt.s32.totalorder %s1307_s26, %s1307_s26 }
  0x92   :  { %1136 = vmatpush3.bf16.msra.mxu0 %v1218_v57 }
  0x93   :  { %p1314_p9 = por %p1313_p8, %p1312_p7 }
  0x95   :  { %p1315_p10 = pnand %p1314_p9, %p1308_p6 }
 0x115   :  { %v1025_v23 = vpop.f32.mrf.mxu0 }
 0x117   :  { %v1047_v20 = vpop.f32.mrf.mxu1  ;;  %v1026_v25 = vpop.f32.mrf.mxu0 }
 0x118   :  { %v1027_v31 = vadd.f32 %v1026_v25, %v1025_v23 }
 0x119   :  { %v1048_v21 = vpop.f32.mrf.mxu1  ;;  %v1028_v28 = vpop.f32.mrf.mxu0 }
 0x11a   :  { %v542_v34 = vadd.f32 %v1027_v31, %v940_v32  ;;  %v1049_v35 = vadd.f32 %v1048_v21, %v1047_v20 }
 0x11b   :  { %v1050_v22 = vpop.f32.mrf.mxu1  ;;  %v1029_v33 = vpop.f32.mrf.mxu0 }
 0x11c   :  { %v1030_v36 = vadd.f32 %v1029_v33, %v1028_v28  ;;  %v583_v39 = vadd.f32 %v1049_v35, %v542_v34 }
 0x11d   :  { %v1051_v24 = vpop.f32.mrf.mxu1 }
 0x11e   :  { %v545_v40 = vadd.f32 %v1030_v36, %v940_v32  ;;  %v1052_v41 = vadd.f32 %v1051_v24, %v1050_v22 }
 0x11f   :  { %v664_v26 = vpop.f32.mrf.mxu1 }
 0x120   :  { %v586_v47 = vadd.f32 %v1052_v41, %v545_v40 }
 0x121   :  { %v1099_v27 = vpop.f32.mrf.mxu1 }
 0x123   :  { %v667_v29 = vpop.f32.mrf.mxu1 }
 0x125   :  { %v1100_v30 = vpop.f32.mrf.mxu1 }
 0x135   :  { %v1069_v37 = vpop.f32.mrf.mxu0 }
 0x137   :  { %v1070_v38 = vpop.f32.mrf.mxu0 }
 0x138   :  { %v1071_v42 = vadd.f32 %v1070_v38, %v1069_v37 }
 0x139   :  { %v1072_v44 = vpop.f32.mrf.mxu0 }
 0x13a   :  { %v624_v45 = vadd.f32 %v1071_v42, %v583_v39 }
 0x13b   :  { %v1073_v46 = vpop.f32.mrf.mxu0 }
 0x13c   :  { %v1074_v48 = vadd.f32 %v1073_v46, %v1072_v44  ;;  %v665_v49 = vadd.f32 %v664_v26, %v624_v45 }
 0x13e   :  { %v627_v50 = vadd.f32 %v1074_v48, %v586_v47  ;;  %v671_v52 = vmax.f32 %v665_v49, 0.0 }
 0x140   :  { %v668_v51 = vadd.f32 %v667_v29, %v627_v50 }
 0x142   :  { %v672_v53 = vmax.f32 %v668_v51, 0.0 }
 0x144   :  { %v673_v54 = vpack.c.bf16 %v672_v53, %v671_v52 }
 0x146   :  { %1118 = vmatmul.mubr.bf16.vlgmr.msra.gmra.mxu1 %v673_v54 }
 0x206   :  { %v779_v59 = vpop.f32.mrf.mxu1 }
 0x207   :  { %v780_v61 = vadd.f32 %v991_v58, %v779_v59 }
 0x208   :  { %v1119_v60 = vpop.f32.mrf.mxu1 }
 0x209   :  { %v786_v1 = vmax.f32 %v780_v61, 0.0 }
 0x20a   :  { %v782_v62 = vpop.f32.mrf.mxu1 }
 0x20b   :  { %v783_v63 = vadd.f32 %v991_v58, %v782_v62 }
 0x20c   :  { %v1120_v0 = vpop.f32.mrf.mxu1 }
 0x20d   :  { %v787_v2 = vmax.f32 %v783_v63, 0.0 }
 0x20f   :  { %v788_v3 = vpack.c.bf16 %v787_v2, %v786_v1 }
 0x211   :  { %1138 = vmatmul.mubr.bf16.vlgmr.msra.gmra.mxu0 %v788_v3 }
 0x2d1   :  { %v894_v4 = vpop.f32.mrf.mxu0 }
 0x2d2   :  { %v895_v5 = vadd.f32 %v1000_v43, %v894_v4 }
 0x2d3   :  { %v1139_v6 = vpop.f32.mrf.mxu0 }
 0x2d4   :  { %901 = vmax.xlane.f32.xlu0 %v895_v5 }
 0x2d5   :  { %v897_v7 = vpop.f32.mrf.mxu0 }
 0x2d6   :  { %v898_v8 = vadd.f32 %v1000_v43, %v897_v7 }
 0x2d7   :  { %v1140_v9 = vpop.f32.mrf.mxu0 }
 0x2d8   :  { %903 = vmax.xlane.f32.xlu0 %v898_v8 }
 0x35d   :  { %v902_v10 = vpop.xlane.xlu0 %901 }
 0x35e   :  { %v905_v11 = vsub.f32 %v895_v5, %v902_v10 }
 0x360   :  { %v907_v12 = vmul.f32 1.442695, %v905_v11 }
 0x361   :  { %v904_v13 = vpop.xlane.xlu0 %903 }
 0x362   :  { %1219 = vpow2.f32 %v907_v12  ;;  %v906_v14 = vsub.f32 %v898_v8, %v904_v13 }
 0x364   :  { %v909_v15 = vmul.f32 1.442695, %v906_v14 }
 0x366   :  { %1221 = vpow2.f32 %v909_v15 }
 0x36f   :  { %v1220_v16 = vpop.eup %1219 }
 0x370   :  { %911 = vadd.xlane.f32.xlu1 %v1220_v16 }
 0x373   :  { %v1222_v17 = vpop.eup %1221 }
 0x374   :  { %913 = vadd.xlane.f32.xlu1 %v1222_v17 }
 0x3f9   :  { %v912_v18 = vpop.xlane.xlu1 %911 }
 0x3fa   :  { %1223 = vrcp.f32 %v912_v18 }
 0x3fd   :  { %v914_v19 = vpop.xlane.xlu1 %913 }
 0x3fe   :  { %1225 = vrcp.f32 %v914_v19 }
 0x407   :  { %v1224_v20 = vpop.eup %1223 }
 0x408   :  { %v917_v21 = vmul.f32 %v1224_v20, %v1220_v16 }
 0x40a   :  { %919 = vst [vmem:[#allocation10] sm:$0xff] %v917_v21 }
 0x40b   :  { %v1226_v22 = vpop.eup %1225 }
 0x40c   :  { %v918_v23 = vmul.f32 %v1226_v22, %v1222_v17 }
 0x40e   :  { %920 = vst [vmem:[#allocation10 + $0x8] sm:$0xff] %v918_v23 }
 0x40f   :  { %1318 = shalt.err (!%p1315_p10)
}
 0x410   :  { %s1346_s27 = smov 128   ;;  %s1347_s28 = smov 8  }
 0x411   :  { %932 = dma.vmem_to_hbm [thread:$0]  %s927_s6, 256, %s1451_s7, [#allocation4], %s1346_s27, %s1346_s27, %s1347_s28  }
 0x412   :  { %1333 = dma.done.wait [#allocation4], 256  }
 0x413   :  { %1334 = vsyncadd [#allocation4], 4294967040 }
 0x414   :  { %936 = vsyncpa [#allocation3], 1 }
 0x415   :  { %937 = vsyncpa [#allocation6], 1 }
 0x416   :  { %938 = vsyncpa [#allocation9], 1 }
 0x417   :  { %939 = vsyncpa [#allocation4], 1 }

</bundles_post_ra>
